<compile_context>
chip_gen: v7x
topology: tpu7x:2x2x1
jax: 0.10.0
libtpu: 0.0.40
codegen_flags: <defaults>
</compile_context>

<pallas_src>
import functools

import jax
import jax.numpy as jnp
from jax.experimental import pallas as pl
from jax.experimental.pallas import tpu as pltpu


def _round_up(x: int, m: int) -> int:
    return (x + m - 1) // m * m


def _triplet_kernel(n_ref, lab_col_ref, lab_row_ref, x_tile_ref, x_all_ref,
                    out_ref, *, margin: float):
    # n_ref:       (1,)    int32  scalar prefetch (SMEM): real batch size N
    # lab_col_ref: (TB, 1) int32  labels of this anchor tile
    # lab_row_ref: (1, Np) int32  labels of all (padded) samples, lane-dense, resident
    # x_tile_ref:  (TB, D) float  anchor-tile features (pipelined per grid step)
    # x_all_ref:   (Np, D) float  all (padded) features, resident across the grid
    # out_ref:     (TB, 1) f32    per-anchor hinge loss (0 for padded anchors)
    tile = pl.program_id(0)
    tb = out_ref.shape[0]

    x_a = x_tile_ref[...].astype(jnp.float32)        # (TB, D)
    x_all = x_all_ref[...].astype(jnp.float32)       # (Np, D)
    np_total, d = x_all.shape

    # Gram block on the MXU: contract over the feature dim (no explicit transpose).
    gram = jax.lax.dot_general(
        x_a, x_all, (((1,), (1,)), ((), ())),
        preferred_element_type=jnp.float32)          # (TB, Np)

    # Row norms.  Anchor side: lane reduction -> natural (TB, 1) column layout.
    # All-samples side: (1, D) x (Np, D)^T MXU matmul so the result lands directly in the
    # lane-dense (1, Np) layout (avoids an XLU transpose of a skinny vector).
    sq_a = jnp.sum(x_a * x_a, axis=1, keepdims=True)                 # (TB, 1)
    ones_row = jnp.ones((1, d), jnp.float32)
    sq_all = jax.lax.dot_general(
        ones_row, x_all * x_all, (((1,), (1,)), ((), ())),
        preferred_element_type=jnp.float32)                          # (1, Np)

    dist2 = sq_a + sq_all - 2.0 * gram                               # (TB, Np)
    dist = jnp.sqrt(jnp.maximum(dist2, 1e-12))

    n_valid = n_ref[0]
    lab_a = lab_col_ref[...]                                         # (TB, 1)
    lab_all = lab_row_ref[...]                                       # (1, Np)

    col_ids = jax.lax.broadcasted_iota(jnp.int32, (tb, np_total), 1)
    valid_col = col_ids < n_valid                                    # drop padded columns
    same = lab_a == lab_all                                          # (TB, Np)
    is_pos = jnp.logical_and(same, valid_col)
    is_neg = jnp.logical_and(jnp.logical_not(same), valid_col)

    dist_ap = jnp.max(jnp.where(is_pos, dist, -jnp.inf), axis=1, keepdims=True)  # (TB, 1)
    dist_an = jnp.min(jnp.where(is_neg, dist, jnp.inf), axis=1, keepdims=True)   # (TB, 1)

    hinge = jnp.maximum(dist_ap - dist_an + margin, 0.0)             # (TB, 1)

    # Zero out padded anchor rows of the (possibly ragged) last tile.
    row_ids = tile * tb + jax.lax.broadcasted_iota(jnp.int32, (tb, 1), 0)
    out_ref[...] = jnp.where(row_ids < n_valid, hinge, 0.0)


def triplet_loss(inputs, targets, *, margin: float = 0.3, block_rows=None):
    """inputs: (N, D) features; targets: (N,) integer labels. Returns scalar f32 loss."""
    n, d = inputs.shape

    if block_rows is None:
        block_rows = min(128, _round_up(n, 8))
    tb = _round_up(int(block_rows), 8)
    n_pad = _round_up(n, tb)
    num_tiles = n_pad // tb

    x = jnp.pad(inputs, ((0, n_pad - n), (0, 0)))
    lab = jnp.pad(targets.astype(jnp.int32), (0, n_pad - n), constant_values=-1)
    lab_col = lab.reshape(n_pad, 1)
    lab_row = lab.reshape(1, n_pad)
    n_arr = jnp.array([n], dtype=jnp.int32)

    kernel = functools.partial(_triplet_kernel, margin=float(margin))

    per_anchor = pl.pallas_call(
        kernel,
        out_shape=jax.ShapeDtypeStruct((n_pad, 1), jnp.float32),
        grid_spec=pltpu.PrefetchScalarGridSpec(
            num_scalar_prefetch=1,
            grid=(num_tiles,),
            in_specs=[
                pl.BlockSpec((tb, 1), lambda i, n_s: (i, 0)),       # anchor-tile labels
                pl.BlockSpec((1, n_pad), lambda i, n_s: (0, 0)),    # all labels (resident)
                pl.BlockSpec((tb, d), lambda i, n_s: (i, 0)),       # anchor features
                pl.BlockSpec((n_pad, d), lambda i, n_s: (0, 0)),    # all features (resident)
            ],
            out_specs=pl.BlockSpec((tb, 1), lambda i, n_s: (i, 0)),
        ),
        compiler_params=pltpu.CompilerParams(
            dimension_semantics=("parallel",),
        ),
    )(n_arr, lab_col, lab_row, x, x)

    # Tiny final reduction in the wrapper, normalized by the GLOBAL batch size.
    return jnp.sum(per_anchor) / n


def _reference(inputs, targets, margin=0.3):
    x = inputs.astype(jnp.float32)
    sq = jnp.sum(x * x, axis=1, keepdims=True)
    dist = jnp.sqrt(jnp.maximum(sq + sq.T - 2.0 * (x @ x.T), 1e-12))
    same = targets[:, None] == targets[None, :]
    dist_ap = jnp.max(jnp.where(same, dist, -jnp.inf), axis=1)
    dist_an = jnp.min(jnp.where(~same, dist, jnp.inf), axis=1)
    return jnp.mean(jnp.maximum(dist_ap - dist_an + margin, 0.0))


if __name__ == "__main__":
    # 3 identities x 4 samples each, 128-dim features (batch deliberately not a multiple
    # of the 8-row tile so the ragged-tile masking path is exercised).
    num_ids, per_id, feat_dim = 3, 4, 128
    batch = num_ids * per_id                      # 12

    key = jax.random.PRNGKey(0)
    # Features on a coarse grid (<= 4 significant bits) so every product / square / sum is
    # exactly representable under any MXU precision mode -> kernel and jnp reference agree
    # to f32 rounding on every TPU generation.
    q = jax.random.randint(key, (batch, feat_dim), 0, 16)
    feats = (q.astype(jnp.float32) - 7.5) / 4.0
    labels = jnp.repeat(jnp.arange(num_ids, dtype=jnp.int32), per_id)

    # Multi-tile path: block_rows=8 -> grid of 2 anchor tiles, second tile is ragged.
    loss_tiled = jax.block_until_ready(
        triplet_loss(feats, labels, margin=0.3, block_rows=8))
    # Default single-tile path.
    loss_single = jax.block_until_ready(triplet_loss(feats, labels, margin=0.3))

    ref = _reference(feats, labels, margin=0.3)
    assert jnp.allclose(loss_tiled, ref, atol=1e-4, rtol=1e-4), (loss_tiled, ref)
    assert jnp.allclose(loss_single, ref, atol=1e-4, rtol=1e-4), (loss_single, ref)
    print("KERNEL_OK")
</pallas_src>

<mosaic_0001>
module attributes {stable_mosaic.version = 11 : i64} {
  func.func @_triplet_kernel(%arg0: i32, %arg1: memref<1xi32, #tpu.memory_space<smem>>, %arg2: memref<8x1xi32, #tpu.memory_space<vmem>>, %arg3: memref<1x16xi32, #tpu.memory_space<vmem>>, %arg4: memref<8x128xf32, #tpu.memory_space<vmem>>, %arg5: memref<16x128xf32, #tpu.memory_space<vmem>>, %arg6: memref<8x1xf32, #tpu.memory_space<vmem>>) attributes {dimension_semantics = [#tpu.dimension_semantics<parallel>], iteration_bounds = array<i64: 2>, scalar_prefetch = 1 : i64, scratch_operands = 0 : i64, tpu.core_type = #tpu.core_type<tc>, window_params = [{transform_indices = @transform_0, window_bounds = array<i64: 8, 1>}, {pipeline_mode = #tpu.pipeline_mode<synchronous>, transform_indices = @transform_1, window_bounds = array<i64: 1, 16>}, {transform_indices = @transform_2, window_bounds = array<i64: 8, 128>}, {pipeline_mode = #tpu.pipeline_mode<synchronous>, transform_indices = @transform_3, window_bounds = array<i64: 16, 128>}, {transform_indices = @transform_4, window_bounds = array<i64: 8, 1>}]} {
    %c0 = arith.constant 0 : index
    %c0_0 = arith.constant 0 : index
    %0 = vector.load %arg4[%c0, %c0_0] : memref<8x128xf32, #tpu.memory_space<vmem>>, vector<8x128xf32>
    %c0_1 = arith.constant 0 : index
    %c0_2 = arith.constant 0 : index
    %1 = vector.load %arg5[%c0_1, %c0_2] : memref<16x128xf32, #tpu.memory_space<vmem>>, vector<16x128xf32>
    %cst = arith.constant dense<0.000000e+00> : vector<8x16xf32>
    %2 = tpu.matmul %0, %1, %cst {dimension_numbers = #tpu.dot_dimension_numbers<[1], [1], [0], [0], [0, 0, 1, 0], [], []>} : vector<8x128xf32>, vector<16x128xf32>, vector<8x16xf32> -> vector<8x16xf32>
    %3 = arith.mulf %0, %0 : vector<8x128xf32>
    %cst_3 = arith.constant dense<0.000000e+00> : vector<8xf32>
    %4 = vector.multi_reduction <add>, %3, %cst_3 [1] : vector<8x128xf32> to vector<8xf32>
    %5 = vector.shape_cast %4 : vector<8xf32> to vector<8x1xf32>
    %cst_4 = arith.constant 1.000000e+00 : f32
    %6 = vector.broadcast %cst_4 : f32 to vector<1x128xf32>
    %7 = arith.mulf %1, %1 : vector<16x128xf32>
    %cst_5 = arith.constant dense<0.000000e+00> : vector<1x16xf32>
    %8 = tpu.matmul %6, %7, %cst_5 {dimension_numbers = #tpu.dot_dimension_numbers<[1], [1], [0], [0], [0, 0, 1, 0], [], []>} : vector<1x128xf32>, vector<16x128xf32>, vector<1x16xf32> -> vector<1x16xf32>
    %9 = vector.broadcast %5 : vector<8x1xf32> to vector<8x16xf32>
    %10 = vector.broadcast %8 : vector<1x16xf32> to vector<8x16xf32>
    %11 = arith.addf %9, %10 : vector<8x16xf32>
    %cst_6 = arith.constant 2.000000e+00 : f32
    %12 = vector.broadcast %cst_6 : f32 to vector<8x16xf32>
    %13 = arith.mulf %12, %2 : vector<8x16xf32>
    %14 = arith.subf %11, %13 : vector<8x16xf32>
    %cst_7 = arith.constant 9.99999996E-13 : f32
    %15 = vector.broadcast %cst_7 : f32 to vector<8x16xf32>
    %16 = arith.maximumf %14, %15 : vector<8x16xf32>
    %17 = math.sqrt %16 : vector<8x16xf32>
    %c0_8 = arith.constant 0 : index
    %18 = memref.load %arg1[%c0_8] : memref<1xi32, #tpu.memory_space<smem>>
    %c0_9 = arith.constant 0 : index
    %c0_10 = arith.constant 0 : index
    %19 = vector.load %arg2[%c0_9, %c0_10] : memref<8x1xi32, #tpu.memory_space<vmem>>, vector<8x1xi32>
    %c0_11 = arith.constant 0 : index
    %c0_12 = arith.constant 0 : index
    %20 = vector.load %arg3[%c0_11, %c0_12] : memref<1x16xi32, #tpu.memory_space<vmem>>, vector<1x16xi32>
    %21 = tpu.iota {dimensions = array<i32: 1>} : vector<8x16xi32>
    %22 = vector.broadcast %18 : i32 to vector<8x16xi32>
    %23 = arith.cmpi slt, %21, %22 : vector<8x16xi32>
    %24 = vector.broadcast %19 : vector<8x1xi32> to vector<8x16xi32>
    %25 = vector.broadcast %20 : vector<1x16xi32> to vector<8x16xi32>
    %26 = arith.cmpi eq, %24, %25 : vector<8x16xi32>
    %27 = arith.andi %26, %23 : vector<8x16xi1>
    %cst_13 = arith.constant dense<true> : vector<8x16xi1>
    %28 = arith.xori %26, %cst_13 : vector<8x16xi1>
    %29 = arith.andi %28, %23 : vector<8x16xi1>
    %cst_14 = arith.constant 0xFF800000 : f32
    %30 = vector.broadcast %cst_14 : f32 to vector<8x16xf32>
    %31 = arith.select %27, %17, %30 : vector<8x16xi1>, vector<8x16xf32>
    %cst_15 = arith.constant dense<0xFF800000> : vector<8xf32>
    %32 = vector.multi_reduction <maximumf>, %31, %cst_15 [1] : vector<8x16xf32> to vector<8xf32>
    %33 = vector.shape_cast %32 : vector<8xf32> to vector<8x1xf32>
    %cst_16 = arith.constant 0x7F800000 : f32
    %34 = vector.broadcast %cst_16 : f32 to vector<8x16xf32>
    %35 = arith.select %29, %17, %34 : vector<8x16xi1>, vector<8x16xf32>
    %cst_17 = arith.constant dense<0x7F800000> : vector<8xf32>
    %36 = vector.multi_reduction <minimumf>, %35, %cst_17 [1] : vector<8x16xf32> to vector<8xf32>
    %37 = vector.shape_cast %36 : vector<8xf32> to vector<8x1xf32>
    %38 = arith.subf %33, %37 : vector<8x1xf32>
    %cst_18 = arith.constant 3.000000e-01 : f32
    %39 = vector.broadcast %cst_18 : f32 to vector<8x1xf32>
    %40 = arith.addf %38, %39 : vector<8x1xf32>
    %cst_19 = arith.constant 0.000000e+00 : f32
    %41 = vector.broadcast %cst_19 : f32 to vector<8x1xf32>
    %42 = arith.maximumf %40, %41 : vector<8x1xf32>
    %c8_i32 = arith.constant 8 : i32
    %43 = arith.muli %arg0, %c8_i32 : i32
    %44 = tpu.iota {dimensions = array<i32: 0>} : vector<8x1xi32>
    %45 = vector.broadcast %43 : i32 to vector<8x1xi32>
    %46 = arith.addi %45, %44 : vector<8x1xi32>
    %47 = vector.broadcast %18 : i32 to vector<8x1xi32>
    %48 = arith.cmpi slt, %46, %47 : vector<8x1xi32>
    %cst_20 = arith.constant 0.000000e+00 : f32
    %49 = vector.broadcast %cst_20 : f32 to vector<8x1xf32>
    %50 = arith.select %48, %42, %49 : vector<8x1xi1>, vector<8x1xf32>
    %c0_21 = arith.constant 0 : index
    %c0_22 = arith.constant 0 : index
    %51 = vector.load %arg6[%c0_21, %c0_22] : memref<8x1xf32, #tpu.memory_space<vmem>>, vector<8x1xf32>
    tpu.vector_store %arg6[%c0_21, %c0_22], %50 {strides = array<i32>} : memref<8x1xf32, #tpu.memory_space<vmem>>, vector<8x1xf32>,
    return
  }
  func.func @transform_0(%arg0: i32, %arg1: memref<1xi32, #tpu.memory_space<smem>>) -> (i32, i32) {
    %c0_i32 = arith.constant 0 : i32
    %c0_i32_0 = arith.constant 0 : i32
    return %arg0, %c0_i32 : i32, i32
  }
  func.func @transform_1(%arg0: i32, %arg1: memref<1xi32, #tpu.memory_space<smem>>) -> (i32, i32) {
    %c0_i32 = arith.constant 0 : i32
    %c0_i32_0 = arith.constant 0 : i32
    %c0_i32_1 = arith.constant 0 : i32
    return %c0_i32, %c0_i32_0 : i32, i32
  }
  func.func @transform_2(%arg0: i32, %arg1: memref<1xi32, #tpu.memory_space<smem>>) -> (i32, i32) {
    %c0_i32 = arith.constant 0 : i32
    %c0_i32_0 = arith.constant 0 : i32
    return %arg0, %c0_i32 : i32, i32
  }
  func.func @transform_3(%arg0: i32, %arg1: memref<1xi32, #tpu.memory_space<smem>>) -> (i32, i32) {
    %c0_i32 = arith.constant 0 : i32
    %c0_i32_0 = arith.constant 0 : i32
    %c0_i32_1 = arith.constant 0 : i32
    return %c0_i32, %c0_i32_0 : i32, i32
  }
  func.func @transform_4(%arg0: i32, %arg1: memref<1xi32, #tpu.memory_space<smem>>) -> (i32, i32) {
    %c0_i32 = arith.constant 0 : i32
    %c0_i32_0 = arith.constant 0 : i32
    return %arg0, %c0_i32 : i32, i32
  }
}

</mosaic_0001>

<bundles_post_ra>
// kernel: tpu_custom_call.1
= control target key start
LH: loop header
LB: loop body
LE: loop exit
PB: predicated region body
PF: predicated region fallthrough
CT: control target
= control target key end

     0   :  { %s734_s0 = inlined_call_operand.<no memory space> [shape: s32[1], index: 0, kind: input, shape index: {}]   ;;  %s735_s1 = inlined_call_operand.vmem [shape: s32[16,1], index: 1, kind: input, shape index: {}]   ;;  %s736_s2 = inlined_call_operand.hbm [shape: s32[1,16], index: 2, kind: input, shape index: {}]   ;;  %s737_s3 = inlined_call_operand.vmem [shape: f32[16,128], index: 3, kind: input, shape index: {}]   ;;  %s738_s4 = inlined_call_operand.vmem [shape: f32[16,128], index: 4, kind: input, shape index: {}]   ;;  %s739_s5 = inlined_call_operand.vmem [shape: f32[16,1], index: 5, kind: output, shape index: {}]  }
   0x1   :  { %10 = sst [smem:[#allocation3]] %s734_s0 }
   0x2   :  { %11 = vsyncpa [#allocation5], 0  ;;  %s652_s20 = smov 0  }
   0x3 LB: > { %s658_s21 = sadd.s32 4294967295, %s610_s20   ;;  %p506_p0 = scmp.ge.s32.totalorder %s610_s20, 1  ;;  %s610_s20 = sphi %s652_s20, %s17_s20  }
   0x4   : > { %p142_p1 = scmp.lt.s32.totalorder %s610_s20, 3  ;;  %p740_p3 = scmp.eq.s32.totalorder %s658_s21, 0 }
   0x5   : > { %s612_s0 = smov [#allocation4]   ;;  %s572_s27 = scalar_lea.hbm %s736_s2, 16 }
   0x6   : > { %p662_p2 = pnand %p506_p0, %p142_p1  ;;  %s155_s23 = sshll.u32 %s612_s0, 4  ;;  %s156_s23 = int_to_ptr.vmem [resolvable:$true] %s155_s23 }
   0x7   : > { %p573_p6 = scmp.ne.s32.totalorder %s736_s2, %s572_s27  ;;  %p579_p10 = scmp.lt.u32.totalorder %s572_s27, %s736_s2 }
   0x8   : > { %s742_s22 = scalar_select %p662_p2, 1, 0 }
   0x9   : > { %p548_p4 = pneg %p662_p2 }
   0xb   : > { %p671_p5 = pnand %p740_p3, %p548_p4 }
   0xd   : > { %p574_p7 = pneg %p671_p5 }
   0xf   : > { %p575_p8 = pnand %p574_p7, %p573_p6 }
  0x11   : > { %p576_p9 = pneg %p575_p8 }
  0x13   : > { %p581_p11 = pnand %p579_p10, %p576_p9 }
  0x15   : > { %584 = shalt.err (!%p581_p11)
}
  0x16   : > { %s585_s7 = scalar_lea.vmem %s156_s23, 16  ;;  %s592_s8 = scalar_lea.vmem %s156_s23, 32 }
  0x17   : > { %p586_p12 = scmp.ne.s32.totalorder %s156_s23, %s585_s7  ;;  %p593_p1 = scmp.lt.s32.totalorder %s156_s23, %s156_s23 }
  0x18   : > { %p594_p4 = scmp.lt.s32.totalorder %s592_s8, %s585_s7 }
  0x19   : > { %p588_p13 = pnand %p586_p12, %p574_p7 }
  0x1a   : > { %p595_p3 = por %p594_p4, %p593_p1 }
  0x1b   : > { %p589_p0 = pneg %p588_p13 }
  0x1d   : > { %p596_p2 = pnand %p595_p3, %p589_p0 }
  0x1f   : > { %599 = shalt.err (!%p596_p2)
}
  0x20   : > { %551 = dma.hbm_to_vmem [thread:$0]  (!%p671_p5), %s736_s2, 16, %s156_s23, [#allocation5]  }
  0x21   : > { %p744_p6 = scmp.ne.s32.totalorder %s742_s22, 0 }
  0x22   : > { %p745_p8 = scmp.eq.s32.totalorder (!%p744_p6), %s658_s21, 0 }
  0x23   : > { %185 = sbr.rel (%p744_p6) target bundleno = 447 (0x1bf), region = 36 }
  0x2a   : > { %605 = dma.done.wait (%p745_p8), [#allocation5], 16   ;;  %p746_p7 = pmov %p745_p8 }
  0x2b   : > { %v613_v0 = vmov 0.0|0.0   ;;  %p213_p2 = scmp.lt.s32.totalorder %s658_s21, 1  ;;  %vm614_vm0 = vmmov 0   ;;  %v615_v1 = vmov 0.0   ;;  %v616_v2 = vmov 0   ;;  %v226_v3 = vld [vmem:[%s738_s4] sm:$0xff] }
  0x2c   : > { %607 = vsyncadd (%p746_p7), [#allocation5], 4294967280  ;;  %541 = vmatprep.subr.bf16.mxu1 %v613_v0  ;;  %538 = vmatprep.subr.bf16.mxu0 %v613_v0  ;;  %v227_v4 = vld [vmem:[%s738_s4 + $0x8] sm:$0xff]  ;;  %v301_v6 = vmul.f32 %v226_v3, %v226_v3  ;;  %v617_v11 = vmov 1.0   ;;  %v373_v13 = vlaneseq  ;;  %s715_s24 = sld [smem:[#allocation3]]  ;;  %vm618_vm3 = vmmov 1  }
  0x2d   : > { %535 = vmatprep.mubr.msk.f32.mxu1 %vm614_vm0, %v615_v1  ;;  %528 = vmatprep.mubr.msk.f32.mxu0 %vm614_vm0, %v615_v1  ;;  %s214_s11 = scalar_select %p213_p2, %s658_s21, 1  ;;  %v302_v7 = vmul.f32 %v227_v4, %v227_v4  ;;  %v539_v8 = vpack.c.bf16 %v227_v4, %v226_v3  ;;  %v514_v26 = vld [vmem:[#allocation4] ss:$0 sm:$0xff]  ;;  %vm407_vm8 = vcmask 130048   ;;  %vm425_vm11 = vcmask 7168  }
  0x2e   : > { %569 = vset.pattern.permute.xlu0 %v616_v2  ;;  %v374_v14 = vshrl.u32 %v373_v13, 7  ;;  %v392_v27 = vand.u32 127, %v373_v13  ;;  %s515_s25 = sshll.u32 %s658_s21, 3 }
  0x2f   : > { %s699_s12 = sshll.u32 %s214_s11, 3  ;;  %v542_v10 = vpack.c.bf16 %v302_v7, %v301_v6  ;;  %540 = vmatpush3.bf16.xpose.msra.mxu0 %v539_v8  ;;  %v421_v41 = vstv %s515_s25 }
  0x30   : > { %s220_s15 = scalar_lea.vmem %s737_s3, %s699_s12  ;;  %s216_s23 = scalar_lea.vmem %s735_s1, %s699_s12  ;;  %v375_v15 = vsub.s32 0, %v374_v14  ;;  %v422_v42 = vadd.s32 %v421_v41, %v374_v14 }
  0x31   : > { %v225_v5 = vld [vmem:[%s220_s15] sm:$0xff]  ;;  %543 = vmatpush3.bf16.xpose.msra.mxu1 %v542_v10  ;;  %s224_s28 = scalar_lea.vmem %s739_s5, %s699_s12 }
  0x32   : > { %v298_v9 = vmul.f32 %v225_v5, %v225_v5  ;;  %v389_v12 = vld [vmem:[%s216_s23] sm:$0xff]  ;;  %v393_v29 = vstv %s715_s24 }
  0x33   : > { %vm718_vm2 = vcmp.lt.s32.totalorder %v392_v27, %v393_v29  ;;  %vm423_vm10 = vcmp.lt.s32.totalorder %v422_v42, %v393_v29 }
  0x34   : > { %299 = vadd.xlane.f32.xlu0 %v298_v9 }
  0x36   : > { %529 = vmatmul.mubr.f32.vlgmr.msra.gmra.mrb[0].mxu0 %v225_v5 }
  0x38   : > { %536 = vmatmul.mubr.f32.vlgmr.msra.gmra.mrb[0].mxu1 %v617_v11 }
  0x4a   : > { %396 = vperm.xlu0 %569, %v389_v12  }
  0xc1   : > { %v300_v19 = vpop.xlane.xlu0 %299 }
  0xc9   : > { %v397_v28 = vpop.permute.xlu0 %396 }
  0xca   : > { %vm402_vm1 = vcmp.eq.s32.totalorder %v397_v28, %v514_v26 }
  0xcb   : > { %vm404_vm4 = vmxor %vm402_vm1, %vm618_vm3 }
  0xcc   : > { %vm403_vm5 = vmand %vm402_vm1, %vm718_vm2 }
  0xcd   : > { %vm405_vm9 = vmand %vm404_vm4, %vm718_vm2 }
 0x109   : > { %v294_v16 = vpop.f32.mrb[0].mxu0 }
 0x10a   : > { %v530_v17 = vpop.f32.mrb[1].mxu0  ;;  %v378_v21 = vmul.f32 2.0, %v294_v16 }
 0x10b   : > { %v369_v18 = vpop.f32.mrb[0].mxu1 }
 0x10c   : > { %v376_v20 = vrot.slane %v369_v18, %v375_v15  ;;  %v537_v22 = vpop.f32.mrb[1].mxu1 }
 0x10e   : > { %v377_v23 = vadd.f32 %v376_v20, %v300_v19 }
 0x110   : > { %v379_v24 = vsub.f32 %v377_v23, %v378_v21 }
 0x112   : > { %v380_v25 = vmax.f32 %v379_v24, 1e-12 }
 0x114   : > { %570 = vrsqrt.f32 %v380_v25  ;;  %vm383_vm6 = vcmp.eq.f32.partialorder %v380_v25, inf  ;;  %v386_v33 = vand.u32 2147483648, %v380_v25  ;;  %vm385_vm7 = vcmp.eq.f32.partialorder %v380_v25, 0.0 }
 0x11e   : > { %v571_v31 = vpop.eup %570 }
 0x11f   : > { %v382_v32 = vmul.f32 %v571_v31, %v380_v25 }
 0x121   : > { %v384_v34 = vsel %vm383_vm6, %v380_v25, %v382_v32 }
 0x122   : > { %v387_v35 = vsel %vm385_vm7, %v386_v33, %v384_v34 }
 0x123   : > { %v406_v36 = vsel %vm403_vm5, %v387_v35, -inf  ;;  %v411_v38 = vsel %vm405_vm9, %v387_v35, inf }
 0x124   : > { %v408_v37 = vsel %vm407_vm8, %v406_v36, -inf  ;;  %v412_v39 = vsel %vm407_vm8, %v411_v38, inf }
 0x125   : > { %409 = vmax.xlane.f32.xlu1 %v408_v37 }
 0x129   : > { %413 = vmin.xlane.f32.xlu1 %v412_v39 }
 0x1b2   : > { %v410_v40 = vpop.xlane.xlu1 %409 }
 0x1b6   : > { %v414_v43 = vpop.xlane.xlu1 %413 }
 0x1b7   : > { %v415_v44 = vsub.f32 %v410_v40, %v414_v43 }
 0x1b9   : > { %v416_v45 = vadd.f32 0.3, %v415_v44 }
 0x1bb   : > { %v417_v46 = vmax.f32 %v416_v45, 0.0 }
 0x1bd   : > { %v424_v47 = vsel %vm423_vm10, %v417_v46, 0.0 }
 0x1be   : > { %426 = vst.msk [vmem:[%s224_s28] sm:$0xff] %vm425_vm11, %v424_v47 }
 0x1bf PF: > { %s17_s20 = sadd.s32 1, %s610_s20  }
 0x1c0   : > { %p14_p3 = scmp.ge.s32.totalorder %s17_s20, 4  }
 0x1c2   :  { %16 = sbr.rel (!%p14_p3) target bundleno = 3 (0x3), region = 74 }
 0x1c9   :  { %446 = vsyncpa [#allocation5], 1 }
 0x1ca   :  { %448 = vsyncpa [#allocation5 + $0x1], 1 }

</bundles_post_ra>
